<compile_context>
chip_gen: v6e
topology: v6e:2x2x1
jax: 0.10.0
libtpu: 0.0.40
codegen_flags: <defaults>
</compile_context>

<pallas_src>
import jax
import jax.numpy as jnp
from jax import lax
from jax.experimental import pallas as pl
from jax.experimental.pallas import tpu as pltpu

HIDDEN = 512
OUT = 256
BN_EPS = 1e-5
LEAKY_SLOPE = 0.2


def _proj_kernel(bn_label_ref,     # SMEM scalar-prefetch: (1,) int32 (used by the index_maps)
                 x_ref,            # (TM, TK)       f32    (streamed per (batch, k) tile)
                 w1_ref,           # (TK, 512)      bf16   (streamed over k; resident if k==1)
                 scale_ref,        # (1, 1, 512)    f32    (selected BN-domain row)
                 shift_ref,        # (1, 1, 512)    f32
                 w2_ref,           # (512, 256)     bf16
                 b2_ref,           # (1, 256)       f32
                 out_ref,          # (TM, 256)      f32
                 acc_ref):         # (TM, 512)      f32 VMEM scratch accumulator
    del bn_label_ref  # domain selection happens inside the BlockSpec index_maps
    k = pl.program_id(1)

    @pl.when(k == 0)
    def _():
        acc_ref[...] = jnp.zeros_like(acc_ref)

    # Linear 1 (no bias): cast the f32 x tile to bf16 in-kernel (VPU), accumulate in f32 (MXU).
    acc_ref[...] += jnp.dot(x_ref[...].astype(jnp.bfloat16), w1_ref[...],
                            preferred_element_type=jnp.float32)

    @pl.when(k == pl.num_programs(1) - 1)
    def _():
        # MultiBatchNorm (eval mode), folded into a single affine: h * scale + shift (f32 VPU).
        h = acc_ref[...] * scale_ref[0] + shift_ref[0]
        # LeakyReLU(0.2); Dropout is identity at inference.
        h = jnp.where(h > 0, h, LEAKY_SLOPE * h)
        # Linear 2 (with bias): bf16 operands, f32 accumulation.
        out = jnp.dot(h.astype(w2_ref.dtype), w2_ref[...],
                      preferred_element_type=jnp.float32) + b2_ref[...]
        out_ref[...] = out.astype(out_ref.dtype)


def _round_up(n, m):
    return ((n + m - 1) // m) * m


def penultimate_proj_abn(x, params, bn_label=0, *, block_b=512, block_k=2048):
    """x: (B, in_dim) float32. Returns (B, 256) float32 (eval-mode forward)."""
    B, in_dim = x.shape
    w1_t, gamma, beta, r_mean, r_var, w2_t, b2 = params
    bn_domains = gamma.shape[0]
    assert w1_t.shape == (in_dim, HIDDEN)
    assert w2_t.shape == (HIDDEN, OUT)

    # ---- wrapper-side parameter prep (O(params) only; x is untouched) -----------------------
    inv_std = lax.rsqrt(r_var.astype(jnp.float32) + BN_EPS)
    scale = (gamma * inv_std).reshape(bn_domains, 1, HIDDEN).astype(jnp.float32)
    shift = (beta - r_mean * gamma * inv_std).reshape(bn_domains, 1, HIDDEN).astype(jnp.float32)
    w1_bf16 = w1_t.astype(jnp.bfloat16)
    w2_bf16 = w2_t.astype(jnp.bfloat16)
    b2_2d = b2.reshape(1, OUT).astype(jnp.float32)
    bn_label_arr = jnp.asarray(bn_label, dtype=jnp.int32).reshape(1)

    # ---- tiling ------------------------------------------------------------------------------
    # Batch tile: multiple of 16 (bf16 sublane packing / MXU M); split into >= 2 tiles when the
    # batch is large enough so the "parallel" axis can use both v7x TensorCores.
    tm = min(block_b, _round_up(B, 16))
    if B > 16 and pl.cdiv(B, tm) < 2:
        tm = _round_up(pl.cdiv(B, 2), 16)
    grid_b = pl.cdiv(B, tm)

    # K tile: multiple of 128 that divides in_dim (lane constraint; exact division so no
    # garbage enters the reduction); otherwise fall back to a single full-width block.
    if in_dim % 128 == 0 and in_dim > block_k:
        tk = max(128, (block_k // 128) * 128)
        while in_dim % tk:
            tk -= 128
    else:
        tk = in_dim
    k_steps = in_dim // tk

    grid_spec = pltpu.PrefetchScalarGridSpec(
        num_scalar_prefetch=1,
        grid=(grid_b, k_steps),
        in_specs=[
            pl.BlockSpec((tm, tk), lambda i, k, lbl: (i, k)),                 # x (f32, streamed)
            pl.BlockSpec((tk, HIDDEN), lambda i, k, lbl: (k, 0)),             # W1^T (bf16)
            pl.BlockSpec((1, 1, HIDDEN), lambda i, k, lbl: (lbl[0], 0, 0)),   # scale[domain]
            pl.BlockSpec((1, 1, HIDDEN), lambda i, k, lbl: (lbl[0], 0, 0)),   # shift[domain]
            pl.BlockSpec((HIDDEN, OUT), lambda i, k, lbl: (0, 0)),            # W2^T (bf16)
            pl.BlockSpec((1, OUT), lambda i, k, lbl: (0, 0)),                 # b2
        ],
        out_specs=pl.BlockSpec((tm, OUT), lambda i, k, lbl: (i, 0)),
        scratch_shapes=[pltpu.VMEM((tm, HIDDEN), jnp.float32)],
    )

    # Explicit VMEM limit derived from the working set (v5e's 16 MiB default scoped limit is
    # too small); capped at 48 MiB so the request is also valid on v7x (64 MiB physical).
    est_vmem = (2 * tm * tk * 4            # x tiles (f32, double-buffered)
                + 2 * tk * HIDDEN * 2      # W1 blocks (bf16, double-buffered)
                + tm * HIDDEN * 4          # accumulator scratch
                + 2 * tm * OUT * 4         # out tiles (f32, double-buffered)
                + 2 * HIDDEN * OUT * 2     # W2 (bf16, double-buffered)
                + 6 * HIDDEN * 4 + 2 * OUT * 4)
    vmem_limit = int(min(max(est_vmem * 3 // 2 + (8 << 20), 32 << 20), 48 << 20))

    flops = 2 * B * in_dim * HIDDEN + 2 * B * HIDDEN * OUT + 4 * B * HIDDEN
    w1_reads = grid_b if k_steps > 1 else 1
    bytes_accessed = (B * in_dim * 4                    # x (f32, read once — no wrapper copy)
                      + w1_reads * in_dim * HIDDEN * 2  # W1^T (bf16)
                      + HIDDEN * OUT * 2                # W2^T (bf16)
                      + 2 * HIDDEN * 4 + OUT * 4        # scale, shift, b2 (f32)
                      + B * OUT * 4)                    # out (f32)

    return pl.pallas_call(
        _proj_kernel,
        out_shape=jax.ShapeDtypeStruct((B, OUT), jnp.float32),
        grid_spec=grid_spec,
        compiler_params=pltpu.CompilerParams(
            dimension_semantics=("parallel", "arbitrary"),
            vmem_limit_bytes=vmem_limit),
        cost_estimate=pl.CostEstimate(
            flops=flops, transcendentals=0, bytes_accessed=bytes_accessed),
    )(bn_label_arr, x, w1_bf16, scale, shift, w2_bf16, b2_2d)


def init_params(key, in_dim, bn_domains):
    """Deterministic synthetic parameters (PyTorch-style uniform bounds)."""
    k1, k2, k3, kg, kb, km, kv = jax.random.split(key, 7)
    bound1 = float(in_dim) ** -0.5
    w1_t = jax.random.uniform(k1, (in_dim, HIDDEN), jnp.float32, -bound1, bound1)
    bound2 = float(HIDDEN) ** -0.5
    w2_t = jax.random.uniform(k2, (HIDDEN, OUT), jnp.float32, -bound2, bound2)
    b2 = jax.random.uniform(k3, (OUT,), jnp.float32, -bound2, bound2)
    # Per-domain BN params (randomized so each domain is actually distinct)
    gamma = 1.0 + 0.1 * jax.random.normal(kg, (bn_domains, HIDDEN), jnp.float32)
    beta = 0.1 * jax.random.normal(kb, (bn_domains, HIDDEN), jnp.float32)
    r_mean = 0.1 * jax.random.normal(km, (bn_domains, HIDDEN), jnp.float32)
    r_var = 1.0 + 0.1 * jax.random.uniform(kv, (bn_domains, HIDDEN), jnp.float32)
    return (w1_t, gamma, beta, r_mean, r_var, w2_t, b2)


def _reference(x, params, bn_label):
    """Pure-JAX reference mirroring the kernel's precision (bf16 operands, f32 accumulate)."""
    w1_t, gamma, beta, r_mean, r_var, w2_t, b2 = params
    inv_std = lax.rsqrt(r_var[bn_label] + BN_EPS)
    scale = gamma[bn_label] * inv_std
    shift = beta[bn_label] - r_mean[bn_label] * scale
    h = jnp.dot(x.astype(jnp.bfloat16), w1_t.astype(jnp.bfloat16),
                preferred_element_type=jnp.float32)
    h = h * scale + shift
    h = jnp.where(h > 0, h, LEAKY_SLOPE * h)
    return jnp.dot(h.astype(jnp.bfloat16), w2_t.astype(jnp.bfloat16),
                   preferred_element_type=jnp.float32) + b2


if __name__ == "__main__":
    key = jax.random.PRNGKey(0)
    kx, kp = jax.random.split(key)

    # Small demo shapes: B=37 is not a multiple of the batch tile (exercises the partial
    # edge block, no wrapper padding), block_b=16 forces a multi-step batch grid, and
    # block_k=128 with in_dim=256 exercises the K-reduction / accumulator path.
    B, in_dim, bn_domains = 37, 256, 2
    x = jax.random.normal(kx, (B, in_dim), jnp.float32)
    params = init_params(kp, in_dim, bn_domains)

    out = penultimate_proj_abn(x, params, bn_label=1, block_b=16, block_k=128)
    out = jax.block_until_ready(out)

    ref = _reference(x, params, bn_label=1)
    assert out.shape == (B, OUT)
    assert jnp.allclose(out, ref, atol=2e-3, rtol=2e-3), float(jnp.max(jnp.abs(out - ref)))
    print("KERNEL_OK")
</pallas_src>

<mosaic_0001>
module attributes {stable_mosaic.version = 11 : i64} {
  func.func @_proj_kernel(%arg0: i32, %arg1: i32, %arg2: memref<1xi32, #tpu.memory_space<smem>>, %arg3: memref<16x128xf32, #tpu.memory_space<vmem>>, %arg4: memref<128x512xbf16, #tpu.memory_space<vmem>>, %arg5: memref<1x1x512xf32, #tpu.memory_space<vmem>>, %arg6: memref<1x1x512xf32, #tpu.memory_space<vmem>>, %arg7: memref<512x256xbf16, #tpu.memory_space<vmem>>, %arg8: memref<1x256xf32, #tpu.memory_space<vmem>>, %arg9: memref<16x256xf32, #tpu.memory_space<vmem>>, %arg10: memref<16x512xf32, #tpu.memory_space<vmem>>) attributes {dimension_semantics = [#tpu.dimension_semantics<parallel>, #tpu.dimension_semantics<arbitrary>], iteration_bounds = array<i64: 3, 2>, scalar_prefetch = 1 : i64, scratch_operands = 1 : i64, tpu.core_type = #tpu.core_type<tc>, window_params = [{transform_indices = @transform_0, window_bounds = array<i64: 16, 128>}, {transform_indices = @transform_1, window_bounds = array<i64: 128, 512>}, {transform_indices = @transform_2, window_bounds = array<i64: 1, 1, 512>}, {transform_indices = @transform_3, window_bounds = array<i64: 1, 1, 512>}, {pipeline_mode = #tpu.pipeline_mode<synchronous>, transform_indices = @transform_4, window_bounds = array<i64: 512, 256>}, {pipeline_mode = #tpu.pipeline_mode<synchronous>, transform_indices = @transform_5, window_bounds = array<i64: 1, 256>}, {transform_indices = @transform_6, window_bounds = array<i64: 16, 256>}]} {
    %c0_i32 = arith.constant 0 : i32
    %0 = arith.cmpi eq, %arg1, %c0_i32 : i32
    %1 = arith.extui %0 : i1 to i32
    %c0_i32_0 = arith.constant 0 : i32
    %2 = arith.cmpi ne, %1, %c0_i32_0 : i32
    scf.if %2 {
      %cst_9 = arith.constant 0.000000e+00 : f32
      %13 = vector.broadcast %cst_9 : f32 to vector<16x512xf32>
      %c0_10 = arith.constant 0 : index
      %c0_11 = arith.constant 0 : index
      %14 = vector.load %arg10[%c0_10, %c0_11] : memref<16x512xf32, #tpu.memory_space<vmem>>, vector<16x512xf32>
      tpu.vector_store %arg10[%c0_10, %c0_11], %13 {strides = array<i32>} : memref<16x512xf32, #tpu.memory_space<vmem>>, vector<16x512xf32>,
    } else {
    }
    %c0 = arith.constant 0 : index
    %c0_1 = arith.constant 0 : index
    %3 = vector.load %arg10[%c0, %c0_1] : memref<16x512xf32, #tpu.memory_space<vmem>>, vector<16x512xf32>
    %c0_2 = arith.constant 0 : index
    %c0_3 = arith.constant 0 : index
    %4 = vector.load %arg3[%c0_2, %c0_3] : memref<16x128xf32, #tpu.memory_space<vmem>>, vector<16x128xf32>
    %5 = arith.truncf %4 : vector<16x128xf32> to vector<16x128xbf16>
    %c0_4 = arith.constant 0 : index
    %c0_5 = arith.constant 0 : index
    %6 = vector.load %arg4[%c0_4, %c0_5] : memref<128x512xbf16, #tpu.memory_space<vmem>>, vector<128x512xbf16>
    %cst = arith.constant dense<0.000000e+00> : vector<16x512xf32>
    %7 = tpu.matmul %5, %6, %cst {dimension_numbers = #tpu.dot_dimension_numbers<[1], [0], [0], [1], [0, 0, 1, 1], [], []>} : vector<16x128xbf16>, vector<128x512xbf16>, vector<16x512xf32> -> vector<16x512xf32>
    %8 = arith.addf %3, %7 : vector<16x512xf32>
    %c0_6 = arith.constant 0 : index
    %c0_7 = arith.constant 0 : index
    %9 = vector.load %arg10[%c0_6, %c0_7] : memref<16x512xf32, #tpu.memory_space<vmem>>, vector<16x512xf32>
    tpu.vector_store %arg10[%c0_6, %c0_7], %8 {strides = array<i32>} : memref<16x512xf32, #tpu.memory_space<vmem>>, vector<16x512xf32>,
    %c1_i32 = arith.constant 1 : i32
    %10 = arith.cmpi eq, %arg1, %c1_i32 : i32
    %11 = arith.extui %10 : i1 to i32
    %c0_i32_8 = arith.constant 0 : i32
    %12 = arith.cmpi ne, %11, %c0_i32_8 : i32
    scf.if %12 {
      %c0_9 = arith.constant 0 : index
      %c0_10 = arith.constant 0 : index
      %13 = vector.load %arg10[%c0_9, %c0_10] : memref<16x512xf32, #tpu.memory_space<vmem>>, vector<16x512xf32>
      %c0_11 = arith.constant 0 : index
      %c0_12 = arith.constant 0 : index
      %c0_13 = arith.constant 0 : index
      %14 = vector.load %arg5[%c0_11, %c0_12, %c0_13] : memref<1x1x512xf32, #tpu.memory_space<vmem>>, vector<1x1x512xf32>
      %15 = vector.shape_cast %14 : vector<1x1x512xf32> to vector<1x512xf32>
      %16 = vector.broadcast %15 : vector<1x512xf32> to vector<16x512xf32>
      %17 = arith.mulf %13, %16 : vector<16x512xf32>
      %c0_14 = arith.constant 0 : index
      %c0_15 = arith.constant 0 : index
      %c0_16 = arith.constant 0 : index
      %18 = vector.load %arg6[%c0_14, %c0_15, %c0_16] : memref<1x1x512xf32, #tpu.memory_space<vmem>>, vector<1x1x512xf32>
      %19 = vector.shape_cast %18 : vector<1x1x512xf32> to vector<1x512xf32>
      %20 = vector.broadcast %19 : vector<1x512xf32> to vector<16x512xf32>
      %21 = arith.addf %17, %20 : vector<16x512xf32>
      %cst_17 = arith.constant 0.000000e+00 : f32
      %22 = vector.broadcast %cst_17 : f32 to vector<16x512xf32>
      %23 = arith.cmpf ogt, %21, %22 : vector<16x512xf32>
      %cst_18 = arith.constant 2.000000e-01 : f32
      %24 = vector.broadcast %cst_18 : f32 to vector<16x512xf32>
      %25 = arith.mulf %24, %21 : vector<16x512xf32>
      %26 = arith.select %23, %21, %25 : vector<16x512xi1>, vector<16x512xf32>
      %27 = arith.truncf %26 : vector<16x512xf32> to vector<16x512xbf16>
      %c0_19 = arith.constant 0 : index
      %c0_20 = arith.constant 0 : index
      %28 = vector.load %arg7[%c0_19, %c0_20] : memref<512x256xbf16, #tpu.memory_space<vmem>>, vector<512x256xbf16>
      %cst_21 = arith.constant dense<0.000000e+00> : vector<16x256xf32>
      %29 = tpu.matmul %27, %28, %cst_21 {dimension_numbers = #tpu.dot_dimension_numbers<[1], [0], [0], [1], [0, 0, 1, 1], [], []>} : vector<16x512xbf16>, vector<512x256xbf16>, vector<16x256xf32> -> vector<16x256xf32>
      %c0_22 = arith.constant 0 : index
      %c0_23 = arith.constant 0 : index
      %30 = vector.load %arg8[%c0_22, %c0_23] : memref<1x256xf32, #tpu.memory_space<vmem>>, vector<1x256xf32>
      %31 = vector.broadcast %30 : vector<1x256xf32> to vector<16x256xf32>
      %32 = arith.addf %29, %31 : vector<16x256xf32>
      %c0_24 = arith.constant 0 : index
      %c0_25 = arith.constant 0 : index
      %33 = vector.load %arg9[%c0_24, %c0_25] : memref<16x256xf32, #tpu.memory_space<vmem>>, vector<16x256xf32>
      tpu.vector_store %arg9[%c0_24, %c0_25], %32 {strides = array<i32>} : memref<16x256xf32, #tpu.memory_space<vmem>>, vector<16x256xf32>,
    } else {
    }
    return
  }
  func.func @transform_0(%arg0: i32, %arg1: i32, %arg2: memref<1xi32, #tpu.memory_space<smem>>) -> (i32, i32) {
    %c0_i32 = arith.constant 0 : i32
    return %arg0, %arg1 : i32, i32
  }
  func.func @transform_1(%arg0: i32, %arg1: i32, %arg2: memref<1xi32, #tpu.memory_space<smem>>) -> (i32, i32) {
    %c0_i32 = arith.constant 0 : i32
    %c0_i32_0 = arith.constant 0 : i32
    return %arg1, %c0_i32 : i32, i32
  }
  func.func @transform_2(%arg0: i32, %arg1: i32, %arg2: memref<1xi32, #tpu.memory_space<smem>>) -> (i32, i32, i32) {
    %c0 = arith.constant 0 : index
    %0 = memref.load %arg2[%c0] : memref<1xi32, #tpu.memory_space<smem>>
    %c0_i32 = arith.constant 0 : i32
    %c0_i32_0 = arith.constant 0 : i32
    %c0_i32_1 = arith.constant 0 : i32
    return %0, %c0_i32, %c0_i32_0 : i32, i32, i32
  }
  func.func @transform_3(%arg0: i32, %arg1: i32, %arg2: memref<1xi32, #tpu.memory_space<smem>>) -> (i32, i32, i32) {
    %c0 = arith.constant 0 : index
    %0 = memref.load %arg2[%c0] : memref<1xi32, #tpu.memory_space<smem>>
    %c0_i32 = arith.constant 0 : i32
    %c0_i32_0 = arith.constant 0 : i32
    %c0_i32_1 = arith.constant 0 : i32
    return %0, %c0_i32, %c0_i32_0 : i32, i32, i32
  }
  func.func @transform_4(%arg0: i32, %arg1: i32, %arg2: memref<1xi32, #tpu.memory_space<smem>>) -> (i32, i32) {
    %c0_i32 = arith.constant 0 : i32
    %c0_i32_0 = arith.constant 0 : i32
    %c0_i32_1 = arith.constant 0 : i32
    return %c0_i32, %c0_i32_0 : i32, i32
  }
  func.func @transform_5(%arg0: i32, %arg1: i32, %arg2: memref<1xi32, #tpu.memory_space<smem>>) -> (i32, i32) {
    %c0_i32 = arith.constant 0 : i32
    %c0_i32_0 = arith.constant 0 : i32
    %c0_i32_1 = arith.constant 0 : i32
    return %c0_i32, %c0_i32_0 : i32, i32
  }
  func.func @transform_6(%arg0: i32, %arg1: i32, %arg2: memref<1xi32, #tpu.memory_space<smem>>) -> (i32, i32) {
    %c0_i32 = arith.constant 0 : i32
    %c0_i32_0 = arith.constant 0 : i32
    return %arg0, %c0_i32 : i32, i32
  }
}

</mosaic_0001>

<bundles_post_ra>
// kernel: tpu_custom_call.1
= control target key start
LH: loop header
LB: loop body
LE: loop exit
PB: predicated region body
PF: predicated region fallthrough
CT: control target
= control target key end

     0   :  { %s2855_s0 = inlined_call_operand.<no memory space> [shape: s32[1], index: 0, kind: input, shape index: {}]   ;;  %s2856_s1 = inlined_call_operand.hbm [shape: f32[37,256], index: 1, kind: input, shape index: {}]   ;;  %s2857_s2 = inlined_call_operand.hbm [shape: bf16[256,512], index: 2, kind: input, shape index: {}]   ;;  %s2858_s3 = inlined_call_operand.hbm [shape: f32[2,1,512], index: 3, kind: input, shape index: {}]   ;;  %s2859_s4 = inlined_call_operand.hbm [shape: f32[2,1,512], index: 4, kind: input, shape index: {}]   ;;  %s2860_s5 = inlined_call_operand.hbm [shape: bf16[512,256], index: 5, kind: input, shape index: {}]   ;;  %s2861_s6 = inlined_call_operand.vmem [shape: f32[1,256], index: 6, kind: input, shape index: {}]   ;;  %s2862_s7 = inlined_call_operand.hbm [shape: f32[37,256], index: 7, kind: output, shape index: {}]  }
   0x1   :  { %2891 = sst [smem:[#allocation37_spill]] %s2856_s1 }
   0x2   :  { %2892 = sst [smem:[#allocation38_spill]] %s2858_s3 }
   0x3   :  { %2893 = sst [smem:[#allocation39_spill]] %s2859_s4 }
   0x4   :  { %2894 = sst [smem:[#allocation40_spill]] %s2860_s5 }
   0x5   :  { %2895 = sst [smem:[#allocation41_spill]] %s2861_s6 }
   0x6   :  { %2896 = sst [smem:[#allocation42_spill]] %s2862_s7 }
   0x7   :  { %12 = sst [smem:[#allocation4]] %s2855_s0 }
   0x8   :  { %13 = vsyncpa [#allocation6], 0 }
   0x9   :  { %15 = vsyncpa [#allocation6 + $0x1], 0 }
   0xa   :  { %16 = vsyncpa [#allocation9], 0 }
   0xb   :  { %18 = vsyncpa [#allocation9 + $0x1], 0 }
   0xc   :  { %19 = vsyncpa [#allocation12], 0 }
   0xd   :  { %20 = vsyncpa [#allocation7], 0 }
   0xe   :  { %22 = vsyncpa [#allocation7 + $0x1], 0  ;;  %s2363_s26 = smov 0   ;;  %s2365_s27 = smov 0  }
   0xf   :  { %s2367_s28 = smov 0   ;;  %s2369_s29 = smov 0  }
  0x10   :  { %s2371_s30 = smov 0   ;;  %s2373_s8 = smov 0  }
  0x11   :  { %s2375_s0 = smov 0   ;;  %s2377_s9 = smov 0  }
  0x12   :  { %s2379_s10 = smov 0   ;;  %s2381_s11 = smov 0  }
  0x13   :  { %s2383_s12 = smov 0   ;;  %s2385_s13 = smov 0  }
  0x14   :  { %s2387_s14 = smov 0   ;;  %s2389_s15 = smov 0  }
  0x15   :  { %s2391_s16 = smov 0   ;;  %s2393_s17 = smov 0  }
  0x16   :  { %s2395_s18 = smov 0   ;;  %s2397_s19 = smov 0  }
  0x17 LB: > { %2897 = sst [smem:[#allocation21_spill]] %s2233_s26  ;;  %s2452_s20 = sadd.s32 4294967295, %s2301_s19   ;;  %s2301_s19 = sphi %s2397_s19, %s28_s19   ;;  %s2297_s18 = sphi %s2395_s18, %s2981_s18   ;;  %s2293_s17 = sphi %s2393_s17, %s2980_s17   ;;  %s2289_s16 = sphi %s2391_s16, %s2979_s16   ;;  %s2285_s15 = sphi %s2389_s15, %s2978_s15   ;;  %s2281_s14 = sphi %s2387_s14, %s2977_s14   ;;  %s2277_s13 = sphi %s2385_s13, %s2976_s13   ;;  %s2273_s12 = sphi %s2383_s12, %s2975_s12   ;;  %s2269_s11 = sphi %s2381_s11, %s2974_s11   ;;  %s2265_s10 = sphi %s2379_s10, %s2973_s10   ;;  %s2261_s9 = sphi %s2377_s9, %s2972_s9   ;;  %s2257_s0 = sphi %s2375_s0, %s2819_s0   ;;  %s2253_s8 = sphi %s2373_s8, %s2971_s8   ;;  %s2249_s30 = sphi %s2371_s30, %s2814_s30   ;;  %s2245_s29 = sphi %s2369_s29, %s2965_s29   ;;  %s2241_s28 = sphi %s2367_s28, %s2964_s28   ;;  %s2237_s27 = sphi %s2365_s27, %s2963_s27   ;;  %s2233_s26 = sphi %s2363_s26, %s2962_s26  }
  0x18   : > { %2898 = sst [smem:[#allocation22_spill]] %s2237_s27  ;;  %s37_s22 = sadd.s32 1, %s2293_s17 }
  0x19   : > { %2899 = sst [smem:[#allocation23_spill]] %s2241_s28  ;;  %s40_s23 = sadd.s32 1, %s2297_s18 }
  0x1a   : > { %2900 = sst [smem:[#allocation24_spill]] %s2249_s30  ;;  %p38_p0 = scmp.ge.s32.totalorder %s37_s22, 2 }
  0x1b   : > { %2901 = sst [smem:[#allocation25_spill]] %s2285_s15  ;;  %s49_s24 = sadd.s32 1, %s2281_s14 }
  0x1c   : > { %2902 = sst [smem:[#allocation26_spill]] %s2289_s16  ;;  %p56_p1 = scmp.ne.s32.totalorder %s2281_s14, %s2277_s13 }
  0x1d   : > { %p57_p2 = scmp.eq.s32.totalorder %s2301_s19, 0  ;;  %s2983_s22 = smov (%p38_p0, %s37_s22), 0 }
  0x1e   : > { %2903 = sst [smem:[#allocation27_spill]] %s2983_s22  ;;  %s2985_s23 = smov (!%p38_p0, %s40_s23), %s2297_s18 }
  0x1f   : > { %s45_s25 = ssub.s32 %s2293_s17, %s2983_s22  ;;  %p2468_p3 = por %p57_p2, %p56_p1 }
  0x20   : > { %p42_p4 = scmp.ge.s32.totalorder %s2985_s23, 3  ;;  %p62_p5 = scmp.ne.s32.totalorder %s2277_s13, %s2273_s12 }
  0x21   : > { %s2904_s21 = scalar_select %p2468_p3, 1, 0 }
  0x22   : > { %p2883_p6 = scmp.eq.s32.totalorder %s2452_s20, 0  ;;  %p73_p7 = scmp.eq.s32.totalorder %s45_s25, 0 }
  0x23   : > { %s2987_s23 = smov (%p42_p4, %s2985_s23), 0  ;;  %s75_s7 = sadd.s32 1, %s2269_s11 }
  0x24   : > { %2905 = sst [smem:[#allocation28_spill]] %s2987_s23  ;;  %p2478_p8 = por %p2883_p6, %p62_p5 }
  0x25   : > { %s44_s16 = ssub.s32 %s2297_s18, %s2987_s23  ;;  %p82_p9 = scmp.ne.s32.totalorder %s2269_s11, %s2265_s10 }
  0x26   : > { %s2906_s22 = scalar_select %p2478_p8, 1, 0 }
  0x27   : > { %s46_s12 = sor.u32 %s45_s25, %s44_s16  ;;  %p88_p10 = scmp.ne.s32.totalorder %s2265_s10, %s2261_s9 }
  0x28   : > { %2907 = sst [smem:[#allocation29_spill]] %s2906_s22  ;;  %p47_p11 = scmp.eq.s32.totalorder %s46_s12, 0 }
  0x29   : > { %p2491_p12 = por %p82_p9, %p57_p2  ;;  %p2503_p13 = por %p88_p10, %p2883_p6 }
  0x2a   : > { %s2496_s15 = scalar_select %p73_p7, %s2269_s11, %s75_s7  }
  0x2b   : > { %s2908_s6 = scalar_select %p2491_p12, 1, 0 }
  0x2c   : > { %2909 = sst [smem:[#allocation30_spill]] %s2496_s15  ;;  %p144_p0 = scmp.ne.s32.totalorder %s2249_s30, %s2245_s29 }
  0x2d   : > { %s2499_s22 = scalar_select %p47_p11, %s2281_s14, %s49_s24  }
  0x2e   : > { %s2911_s23 = scalar_select %p2503_p13, 1, 0 }
  0x2f   : > { %2910 = sst [smem:[#allocation31_spill]] %s2499_s22  ;;  %p197_p1 = scmp.eq.s32.totalorder %s44_s16, 0 }
  0x30   : > { %2912 = sst [smem:[#allocation32_spill]] %s2911_s23  ;;  %s199_s25 = sadd.s32 1, %s2241_s28 }
  0x31   : > { %p2512_p4 = por %p144_p0, %p2883_p6  ;;  %p209_p2 = scmp.ne.s32.totalorder %s2241_s28, %s2237_s27 }
  0x32   : > { %s2519_s12 = scalar_select %p197_p1, %s2241_s28, %s199_s25  }
  0x33   : > { %s2913_s9 = scalar_select %p2512_p4, 1, 0 }
  0x34   : > { %2915 = sst [smem:[#allocation34_spill]] %s2519_s12  ;;  %p210_p5 = scmp.eq.s32.totalorder %s2452_s20, 5 }
  0x35   : > { %2914 = sst [smem:[#allocation33_spill]] %s2913_s9  ;;  %p215_p7 = scmp.ne.s32.totalorder %s2237_s27, %s2233_s26 }
  0x36   : > { %s2916_s7 = sadd.s32 4294967294, %s2301_s19   ;;  %p1479_p10 = scmp.ge.s32.totalorder %s2301_s19, 1 }
  0x37   : > { %p216_p9 = scmp.eq.s32.totalorder %s2916_s7, 5  ;;  %p2527_p11 = por %p210_p5, %p209_p2 }
  0x38   : > { %p223_p13 = scmp.lt.s32.totalorder %s2301_s19, 7  ;;  %s2536_s16 = sld [smem:[#allocation4]] }
  0x39   : > { %s2917_s24 = scalar_select %p2527_p11, 1, 0 }
  0x3a   : > { %p2532_p8 = por %p216_p9, %p215_p7  ;;  %p2538_p0 = pnand %p1479_p10, %p223_p13 }
  0x3b   : > { %2918 = sst [smem:[#allocation35_spill]] %s2917_s24  ;;  %s2303_s7 = smov [#allocation11]  }
  0x3c   : > { %s2919_s29 = scalar_select %p2532_p8, 1, 0 }
  0x3d   : > { %s2921_s25 = scalar_select %p2538_p0, 1, 0 }
  0x3e   : > { %2920 = sst [smem:[#allocation36_spill]] %s2919_s29  ;;  %s255_s22 = sshll.u32 %s2303_s7, 4  ;;  %s256_s22 = int_to_ptr.vmem [resolvable:$true] %s255_s22 }
  0x3f   : > { %p2882_p1 = pneg %p2538_p0  ;;  %s1613_s30 = sshll.u32 %s2536_s16, 6 }
  0x40   : > { %s2923_s4 = sld [smem:[#allocation39_spill]] }
  0x41   : > { %p2549_p2 = pnand %p2882_p1, %p2512_p4 }
  0x43   : > { %p1969_p5 = pneg %p2549_p2 }
  0x46   : > { %s253_s29 = scalar_lea.hbm %s2923_s4, %s1613_s30  ;;  %s1972_s27 = scalar_lea.hbm %s2923_s4, 128 }
  0x47   : > { %s1967_s26 = scalar_lea.hbm %s253_s29, 64  ;;  %p1973_p10 = scmp.lt.s32.totalorder %s253_s29, %s2923_s4 }
  0x48   : > { %p1968_p13 = scmp.ne.s32.totalorder %s253_s29, %s1967_s26  ;;  %p1974_p1 = scmp.lt.s32.totalorder %s1972_s27, %s1967_s26 }
  0x4a   : > { %p1970_p7 = pnand %p1969_p5, %p1968_p13  ;;  %p1975_p6 = por %p1974_p1, %p1973_p10 }
  0x4c   : > { %p1971_p9 = pneg %p1970_p7 }
  0x4e   : > { %p1976_p8 = pnand %p1975_p6, %p1971_p9 }
  0x50   : > { %1979 = shalt.err (!%p1976_p8)
}
  0x51   : > { %s1980_s28 = scalar_lea.vmem %s256_s22, 64  ;;  %p1988_p3 = scmp.lt.s32.totalorder %s256_s22, %s256_s22 }
  0x52   : > { %p1981_p11 = scmp.ne.s32.totalorder %s256_s22, %s1980_s28  ;;  %p1989_p0 = scmp.lt.s32.totalorder %s1980_s28, %s1980_s28 }
  0x54   : > { %p1983_p4 = pnand %p1981_p11, %p1969_p5  ;;  %p1990_p13 = por %p1989_p0, %p1988_p3 }
  0x56   : > { %p1984_p12 = pneg %p1983_p4 }
  0x58   : > { %p1991_p7 = pnand %p1990_p13, %p1984_p12 }
  0x5a   : > { %1994 = shalt.err (!%p1991_p7)
}
  0x5b   : > { %1638 = dma.hbm_to_vmem [thread:$0]  (!%p2549_p2), %s253_s29, 64, %s256_s22, [#allocation12]  }
  0x5c   : > { %p116_p1 = scmp.ne.s32.totalorder %s2257_s0, %s2253_s8  ;;  %s2924_s3 = sld [smem:[#allocation38_spill]] }
  0x5d   : > { %p2925_p6 = scmp.eq.s32.totalorder %s2452_s20, 0  ;;  %s2304_s12 = smov [#allocation10]  }
  0x5e   : > { %s240_s24 = sshll.u32 %s2304_s12, 4  ;;  %p2927_p3 = scmp.ne.s32.totalorder %s2921_s25, 0  ;;  %s241_s24 = int_to_ptr.vmem [resolvable:$true] %s240_s24 }
  0x5f   : > { %p2574_p8 = por %p116_p1, %p2925_p6  ;;  %s2305_s8 = smov [#allocation13]  }
  0x60   : > { %p2928_p12 = pneg %p2927_p3  ;;  %s265_s22 = sshll.u32 %s2305_s8, 4  ;;  %s266_s22 = int_to_ptr.vmem [resolvable:$true] %s265_s22 }
  0x61   : > { %s2926_s9 = scalar_select %p2574_p8, 1, 0 }
  0x62   : > { %s238_s23 = scalar_lea.hbm %s2924_s3, %s1613_s30  ;;  %p2583_p4 = pnand %p2928_p12, %p2574_p8 }
  0x63   : > { %s1995_s30 = scalar_lea.hbm %s238_s23, 64  ;;  %s2000_s7 = scalar_lea.hbm %s2924_s3, 128 }
  0x64   : > { %p1996_p11 = scmp.ne.s32.totalorder %s238_s23, %s1995_s30  ;;  %p1997_p0 = pneg %p2583_p4 }
  0x65   : > { %p2001_p9 = scmp.lt.s32.totalorder %s238_s23, %s2924_s3  ;;  %p2002_p10 = scmp.lt.s32.totalorder %s2000_s7, %s1995_s30 }
  0x66   : > { %p1998_p2 = pnand %p1997_p0, %p1996_p11 }
  0x67   : > { %p2003_p13 = por %p2002_p10, %p2001_p9 }
  0x68   : > { %p1999_p5 = pneg %p1998_p2 }
  0x6a   : > { %p2004_p7 = pnand %p2003_p13, %p1999_p5 }
  0x6c   : > { %2007 = shalt.err (!%p2004_p7)
}
  0x6d   : > { %s2008_s27 = scalar_lea.vmem %s241_s24, 64  ;;  %p2016_p8 = scmp.lt.s32.totalorder %s241_s24, %s241_s24 }
  0x6e   : > { %p2009_p1 = scmp.ne.s32.totalorder %s241_s24, %s2008_s27  ;;  %p2017_p3 = scmp.lt.s32.totalorder %s2008_s27, %s2008_s27 }
  0x70   : > { %p2011_p6 = pnand %p2009_p1, %p1997_p0  ;;  %p2018_p11 = por %p2017_p3, %p2016_p8 }
  0x72   : > { %p2012_p12 = pneg %p2011_p6 }
  0x74   : > { %p2019_p2 = pnand %p2018_p11, %p2012_p12 }
  0x76   : > { %2022 = shalt.err (!%p2019_p2)
}
  0x77   : > { %1635 = dma.hbm_to_vmem [thread:$0]  (!%p2583_p4), %s238_s23, 64, %s241_s24, [#allocation9]  }
  0x78   : > { %p2930_p9 = scmp.eq.s32.totalorder %s2452_s20, 0  ;;  %p2931_p10 = scmp.ne.s32.totalorder %s2921_s25, 0 }
  0x79   : > { %s2034_s12 = scalar_lea.vmem %s266_s22, 8192  ;;  %p2042_p3 = scmp.lt.s32.totalorder %s266_s22, %s266_s22 }
  0x7a   : > { %p2932_p5 = pneg %p2931_p10  ;;  %p2035_p0 = scmp.ne.s32.totalorder %s266_s22, %s2034_s12 }
  0x7b   : > { %p2043_p8 = scmp.lt.s32.totalorder %s2034_s12, %s2034_s12 }
  0x7c   : > { %p1639_p13 = pnand %p2932_p5, %p2930_p9 }
  0x7d   : > { %p2044_p11 = por %p2043_p8, %p2042_p3 }
  0x7e   : > { %p2025_p7 = pneg %p1639_p13 }
  0x80   : > { %p2037_p1 = pnand %p2035_p0, %p2025_p7 }
  0x82   : > { %p2038_p6 = pneg %p2037_p1 }
  0x84   : > { %p2045_p12 = pnand %p2044_p11, %p2038_p6 }
  0x86   : > { %2048 = shalt.err (!%p2045_p12)
}
  0x87   : > { %s2306_s8 = smov 128   ;;  %s2307_s15 = smov 8  }
  0x88   : > { %s2933_s5 = sld [smem:[#allocation40_spill]]  ;;  %p1485_p4 = scmp.ge.s32.totalorder %s2301_s19, 6 }
  0x89   : > { %p2934_p2 = scmp.ne.s32.totalorder (!%p1485_p4), %s2904_s21, 0 }
  0x8a   : > { %278 = sbr.rel (%p1485_p4) target bundleno = 200 (0xc8), region = 32 }
  0x8e   : > { %1641 = dma.hbm_to_vmem [thread:$0]  (!%p1639_p13), %s2933_s5, 8192, %s266_s22, [#allocation12], %s2306_s8, %s2306_s8, %s2307_s15  }
  0x8f   : > { %281 = sbr.rel (!%p2934_p2) target bundleno = 183 (0xb7), region = 36  ;;  %s282_s23 = sand.u32 (%p2934_p2), 1, %s2281_s14  }
  0x90   : > { %s1487_s24 = sshll.u32 (%p2934_p2), %s2297_s18, 1  ;;  %s1486_s16 = sshll.u32 (%p2934_p2), %s282_s23, 4 }
  0x91   : > { %s288_s7 = ssub.s32 (%p2934_p2), 5, %s1487_s24  ;;  %s2613_s27 = scalar_lea.sflag (%p2934_p2), [#allocation6], %s282_s23 }
  0x92   : > { %p289_p9 = scmp.lt.s32.totalorder (%p2934_p2), %s288_s7, 2  ;;  %s286_s22 = scalar_lea.vmem (%p2934_p2), [#allocation5], %s1486_s16 }
  0x94   : > { %s2989_s7 = smov (!%p289_p9, %s288_s7), 2 }
  0x95   : > { %s2610_s28 = sshll.u32 %s2989_s7, 7 }
  0x96   : > { %s293_s26 = ssub.s32 256, %s2610_s28 }
  0x97   : > { %294 = vsyncadd %s2613_s27, %s293_s26  ;;  %p1489_p10 = scmp.ne.s32.totalorder %s2610_s28, 0  ;;  %s1614_s21 = sshll.u32 %s2297_s18, 2 }
  0x98   : > { %s297_s12 = sadd.s32 %s2293_s17, %s1614_s21  ;;  %s301_s8 = sshll.u32 %s286_s22, 4  ;;  %s2619_s8 = int_to_ptr.vmem [resolvable:$true] %s301_s8 }
  0x99   : > { %s1491_s15 = sshll.u32 %s297_s12, 7  ;;  %s2935_s1 = sld [smem:[#allocation37_spill]] }
  0x9f   : > { %s2624_s23 = scalar_lea.hbm %s2935_s1, %s1491_s15  ;;  %s2053_s26 = scalar_lea.hbm %s2935_s1, 1280 }
  0xa0   : > { %s2049_s24 = scalar_lea.hbm %s2624_s23, %s2610_s28 }
  0xa1   : > { %p2050_p5 = scmp.ne.s32.totalorder %s2624_s23, %s2049_s24  ;;  %p2055_p0 = scmp.lt.s32.totalorder %s2053_s26, %s2049_s24 }
  0xa3   : > { %p2051_p13 = pnand %p2050_p5, %p1489_p10 }
  0xa5   : > { %p2052_p7 = pneg %p2051_p13 }
  0xa7   : > { %p2057_p1 = pnand %p2055_p0, %p2052_p7 }
  0xa9   : > { %2060 = shalt.err (!%p2057_p1)
}
  0xaa   : > { %s2061_s22 = scalar_lea.vmem %s2619_s8, %s2610_s28  ;;  %s2308_s21 = smov [#allocation5]  }
  0xab   : > { %p2062_p6 = scmp.ne.s32.totalorder %s2619_s8, %s2061_s22  ;;  %s2065_s12 = sshll.u32 %s2308_s21, 4  ;;  %s2066_s12 = int_to_ptr.vmem [resolvable:$false] %s2065_s12 }
  0xac   : > { %s2067_s15 = scalar_lea.vmem %s2066_s12, 512  ;;  %p2068_p11 = scmp.lt.s32.totalorder %s2619_s8, %s2066_s12 }
  0xad   : > { %p2063_p3 = pnand %p2062_p6, %p1489_p10  ;;  %p2069_p12 = scmp.lt.s32.totalorder %s2067_s15, %s2061_s22 }
  0xaf   : > { %p2064_p8 = pneg %p2063_p3  ;;  %p2070_p4 = por %p2069_p12, %p2068_p11 }
  0xb1   : > { %p2071_p2 = pnand %p2070_p4, %p2064_p8 }
  0xb3   : > { %2074 = shalt.err (!%p2071_p2)
}
  0xb4   : > { %s2309_s30 = smov 256   ;;  %s2310_s29 = smov 128  }
  0xb5   : > { %s2311_s24 = smov 8  }
  0xb6   : > { %307 = dma.hbm_to_vmem [thread:$0]  (%p1489_p10), %s2624_s23, %s2610_s28, %s2619_s8, %s2613_s27, %s2309_s30, %s2310_s29, %s2311_s24  }
  0xb7 PF: > { %s311_s16 = sand.u32 1, %s2301_s19   ;;  %s313_s7 = sand.u32 1, %s2269_s11  }
  0xb8   : > { %s1494_s26 = sshll.u32 %s313_s7, 8  ;;  %s1616_s22 = sshll.u32 %s2293_s17, 12 }
  0xb9   : > { %s322_s15 = scalar_lea.hbm %s2857_s2, %s1616_s22  ;;  %s315_s1 = scalar_lea.vmem [#allocation8], %s1494_s26 }
  0xba   : > { %s323_s3 = sshll.u32 %s315_s1, 4  ;;  %s312_s4 = scalar_lea.sflag [#allocation9], %s311_s16  ;;  %s324_s3 = int_to_ptr.vmem [resolvable:$true] %s323_s3 }
  0xbb   : > { %s2087_s5 = scalar_lea.vmem %s324_s3, 4096  ;;  %p2936_p10 = scmp.ne.s32.totalorder %s2908_s6, 0 }
  0xbc   : > { %p2088_p9 = scmp.ne.s32.totalorder %s324_s3, %s2087_s5  ;;  %s2312_s28 = smov [#allocation8]  }
  0xbd   : > { %s2091_s27 = sshll.u32 %s2312_s28, 4  ;;  %s2092_s27 = int_to_ptr.vmem [resolvable:$false] %s2091_s27 }
  0xbe   : > { %p2089_p5 = pnand %p2088_p9, %p2936_p10  ;;  %s2093_s8 = scalar_lea.vmem %s2092_s27, 8192 }
  0xbf   : > { %p2094_p7 = scmp.lt.s32.totalorder %s324_s3, %s2092_s27  ;;  %p2095_p0 = scmp.lt.s32.totalorder %s2093_s8, %s2087_s5 }
  0xc0   : > { %p2090_p13 = pneg %p2089_p5 }
  0xc1   : > { %p2096_p1 = por %p2095_p0, %p2094_p7 }
  0xc3   : > { %p2097_p6 = pnand %p2096_p1, %p2090_p13 }
  0xc5   : > { %2100 = shalt.err (!%p2097_p6)
}
  0xc6   : > { %s2313_s23 = smov 256   ;;  %s2314_s30 = smov 16  }
  0xc7   : > { %1624 = dma.hbm_to_vmem [thread:$0]  (%p2936_p10), %s322_s15, 4096, %s324_s3, %s312_s4, %s2313_s23, %s2313_s23, %s2314_s30  }
  0xc8 PF: > { %p2937_p3 = scmp.ne.s32.totalorder %s2921_s25, 0 }
  0xc9   : > { %s2938_s1 = sld [smem:[#allocation29_spill]] (!%p2937_p3)  ;;  %s337_s29 = sand.u32 (!%p2937_p3), 1, %s2277_s13  }
  0xca   : > { %335 = sbr.rel (%p2937_p3) target bundleno = 803 (0x323), region = 44  ;;  %s2659_s24 = sshll.u32 (!%p2937_p3), %s337_s29, 4 }
  0xcb   : > { %s338_s16 = scalar_lea.sflag (!%p2937_p3), [#allocation6], %s337_s29  ;;  %s341_s5 = scalar_lea.vmem (!%p2937_p3), [#allocation5], %s2659_s24 }
  0xcf   : > { %p2939_p8 = scmp.ne.s32.totalorder %s2938_s1, 0 }
  0xd1   : > { %2208 = dma.done.wait (%p2939_p8), %s338_s16, 256  }
  0xd2   : > { %2210 = vsyncadd (%p2939_p8), %s338_s16, 4294967040  ;;  %s2940_s3 = sld [smem:[#allocation32_spill]]  ;;  %s346_s4 = sand.u32 1, %s2452_s20  }
  0xd3   : > { %s348_s6 = sand.u32 1, %s2265_s10   ;;  %s347_s7 = scalar_lea.sflag [#allocation9], %s346_s4 }
  0xd4   : > { %s1500_s25 = sshll.u32 %s348_s6, 8 }
  0xd5   : > { %s2668_s26 = scalar_lea.vmem [#allocation8], %s1500_s25 }
  0xd8   : > { %p2941_p11 = scmp.ne.s32.totalorder %s2940_s3, 0 }
  0xda   : > { %2212 = dma.done.wait (%p2941_p11), %s347_s7, 4096  }
  0xdb   : > { %2214 = vsyncadd (%p2941_p11), %s347_s7, 4294963200  ;;  %p2942_p12 = scmp.ne.s32.totalorder %s2926_s9, 0 }
  0xdd   : > { %2216 = dma.done.wait (%p2942_p12), [#allocation9], 64  }
  0xde   : > { %2218 = vsyncadd (%p2942_p12), [#allocation9], 4294967232  ;;  %s2943_s22 = sld [smem:[#allocation33_spill]] }
  0xe4   : > { %p2944_p4 = scmp.ne.s32.totalorder %s2943_s22, 0 }
  0xe6   : > { %2220 = dma.done.wait (%p2944_p4), [#allocation12], 64  }
  0xe7   : > { %2222 = vsyncadd (%p2944_p4), [#allocation12], 4294967232  ;;  %p2945_p2 = scmp.eq.s32.totalorder %s2452_s20, 0 }
  0xe9   : > { %2224 = dma.done.wait (%p2945_p2), [#allocation12], 8192   ;;  %p2946_p9 = pmov %p2945_p2 }
  0xea   : > { %s2947_s21 = sld [smem:[#allocation22_spill]] }
  0xeb   : > { %2226 = vsyncadd (%p2946_p9), [#allocation12], 4294959104  ;;  %s2948_s9 = sld [smem:[#allocation25_spill]] }
  0xf0   : > { %s393_s12 = sand.u32 1, %s2947_s21  }
  0xf1   : > { %s1502_s15 = sshll.u32 %s393_s12, 5  ;;  %p1503_p10 = scmp.ne.s32.totalorder %s2948_s9, 0 }
  0xf2   : > { %s2689_s28 = scalar_lea.vmem [#allocation14], %s1502_s15 }
  0xf3   : > { %414 = sbr.rel (%p1503_p10) target bundleno = 253 (0xfd), region = 68 }
  0xf8   : > { %v2315_v0 = vmov 0.0  }
  0xf9   : > { %415 = vst [vmem:[#allocation2 + $0x30] sm:$0xff] %v2315_v0  ;;  %416 = vst [vmem:[#allocation2] sm:$0xff] %v2315_v0 }
  0xfa   : > { %417 = vst [vmem:[#allocation2 + $0x18] sm:$0xff] %v2315_v0  ;;  %418 = vst [vmem:[#allocation2 + $0x10] sm:$0xff] %v2315_v0 }
  0xfb   : > { %419 = vst [vmem:[#allocation2 + $0x8] sm:$0xff] %v2315_v0  ;;  %420 = vst [vmem:[#allocation2 + $0x20] sm:$0xff] %v2315_v0 }
  0xfc   : > { %421 = vst [vmem:[#allocation2 + $0x28] sm:$0xff] %v2315_v0  ;;  %422 = vst [vmem:[#allocation2 + $0x38] sm:$0xff] %v2315_v0 }
  0xfd PF: > { %v1823_v1 = vld [vmem:[%s2668_s26 + $0xe4] ss:$16 sps:$4 sm:$0xff]   ;;  %v1825_v2 = vld [vmem:[%s2668_s26 + $0xec] ss:$16 sps:$4 sm:$0xff]   ;;  %v2316_v3 = vmov 0   ;;  %s2949_s20 = sld [smem:[#allocation25_spill]] }
  0xfe   : > { %658 = vmatprep.mubr.bf16.mxu0 %v2316_v3  ;;  %701 = vmatprep.mubr.bf16.mxu1 %v2316_v3  ;;  %v1827_v4 = vld [vmem:[%s2668_s26 + $0xe0] ss:$16 sps:$4 sm:$0xff]   ;;  %v1828_v5 = vld [vmem:[%s2668_s26 + $0xe8] ss:$16 sps:$4 sm:$0xff]   ;;  %v1829_v6 = vld [vmem:[%s2668_s26 + $0xc4] ss:$16 sps:$4 sm:$0xff]  }
  0xff   : > { %626 = vmatprep.subr.bf16.mxu0 %v1823_v1  ;;  %669 = vmatprep.subr.bf16.mxu1 %v1825_v2  ;;  %v1831_v7 = vld [vmem:[%s2668_s26 + $0xcc] ss:$16 sps:$4 sm:$0xff]   ;;  %v1833_v8 = vld [vmem:[%s2668_s26 + $0xc0] ss:$16 sps:$4 sm:$0xff]   ;;  %v1834_v9 = vld [vmem:[%s2668_s26 + $0xc8] ss:$16 sps:$4 sm:$0xff]  }
 0x100   : > { %627 = vmatpush1.bf16.msra.mxu0 %v1827_v4  ;;  %670 = vmatpush1.bf16.msra.mxu1 %v1828_v5  ;;  %v1835_v10 = vld [vmem:[%s2668_s26 + $0xa4] ss:$16 sps:$4 sm:$0xff]   ;;  %v1837_v11 = vld [vmem:[%s2668_s26 + $0xac] ss:$16 sps:$4 sm:$0xff]   ;;  %v1839_v12 = vld [vmem:[%s2668_s26 + $0xa0] ss:$16 sps:$4 sm:$0xff]  }
 0x101   : > { %628 = vmatprep.subr.bf16.mxu0 %v1829_v6  ;;  %671 = vmatprep.subr.bf16.mxu1 %v1831_v7  ;;  %v1840_v13 = vld [vmem:[%s2668_s26 + $0xa8] ss:$16 sps:$4 sm:$0xff]   ;;  %v1841_v14 = vld [vmem:[%s2668_s26 + $0x84] ss:$16 sps:$4 sm:$0xff]   ;;  %v1843_v15 = vld [vmem:[%s2668_s26 + $0x8c] ss:$16 sps:$4 sm:$0xff]  }
 0x102   : > { %v1845_v16 = vld [vmem:[%s2668_s26 + $0x80] ss:$16 sps:$4 sm:$0xff]   ;;  %v1846_v17 = vld [vmem:[%s2668_s26 + $0x88] ss:$16 sps:$4 sm:$0xff]   ;;  %v1847_v18 = vld [vmem:[%s2668_s26 + $0x64] ss:$16 sps:$4 sm:$0xff]  }
 0x103   : > { %v1849_v19 = vld [vmem:[%s2668_s26 + $0x6c] ss:$16 sps:$4 sm:$0xff]   ;;  %v1851_v20 = vld [vmem:[%s2668_s26 + $0x60] ss:$16 sps:$4 sm:$0xff]   ;;  %v1852_v21 = vld [vmem:[%s2668_s26 + $0x68] ss:$16 sps:$4 sm:$0xff]  }
 0x104   : > { %629 = vmatpush1.bf16.msra.mxu0 %v1833_v8  ;;  %672 = vmatpush1.bf16.msra.mxu1 %v1834_v9  ;;  %v1853_v22 = vld [vmem:[%s2668_s26 + $0x44] ss:$16 sps:$4 sm:$0xff]   ;;  %v1855_v23 = vld [vmem:[%s2668_s26 + $0x4c] ss:$16 sps:$4 sm:$0xff]   ;;  %v1857_v24 = vld [vmem:[%s2668_s26 + $0x40] ss:$16 sps:$4 sm:$0xff]  }
 0x105   : > { %630 = vmatprep.subr.bf16.mxu0 %v1835_v10  ;;  %673 = vmatprep.subr.bf16.mxu1 %v1837_v11  ;;  %v1858_v25 = vld [vmem:[%s2668_s26 + $0x48] ss:$16 sps:$4 sm:$0xff]   ;;  %v1859_v26 = vld [vmem:[%s2668_s26 + $0x24] ss:$16 sps:$4 sm:$0xff]   ;;  %v1861_v27 = vld [vmem:[%s2668_s26 + $0x2c] ss:$16 sps:$4 sm:$0xff]  }
 0x106   : > { %v1863_v28 = vld [vmem:[%s2668_s26 + $0x20] ss:$16 sps:$4 sm:$0xff]   ;;  %v1864_v29 = vld [vmem:[%s2668_s26 + $0x28] ss:$16 sps:$4 sm:$0xff]   ;;  %v1865_v30 = vld [vmem:[%s2668_s26 + $0x4] ss:$16 sps:$4 sm:$0xff]  }
 0x107   : > { %v1867_v31 = vld [vmem:[%s2668_s26 + $0xc] ss:$16 sps:$4 sm:$0xff]   ;;  %v1869_v32 = vld [vmem:[%s2668_s26] ss:$16 sps:$4 sm:$0xff]   ;;  %v1870_v33 = vld [vmem:[%s2668_s26 + $0x8] ss:$16 sps:$4 sm:$0xff]  }
 0x108   : > { %631 = vmatpush1.bf16.msra.mxu0 %v1839_v12  ;;  %674 = vmatpush1.bf16.msra.mxu1 %v1840_v13  ;;  %v431_v34 = vld [vmem:[%s341_s5] sm:$0xff]  ;;  %v432_v35 = vld [vmem:[%s341_s5 + $0x8] sm:$0xff]  ;;  %p1536_p5 = scmp.ne.s32.totalorder %s2949_s20, 1 }
 0x109   : > { %632 = vmatprep.subr.bf16.mxu0 %v1841_v14  ;;  %675 = vmatprep.subr.bf16.mxu1 %v1843_v15  ;;  %v433_v36 = vpack.c.bf16 %v432_v35, %v431_v34  ;;  %v423_v37 = vld [vmem:[#allocation2 + $0x30] sm:$0xff]  ;;  %v425_v38 = vld [vmem:[#allocation2 + $0x18] sm:$0xff]  ;;  %v424_v41 = vld [vmem:[#allocation2] sm:$0xff]  ;;  %s2950_s23 = sld [smem:[#allocation41_spill]] (!%p1536_p5) }
 0x10a   : > { %v426_v42 = vld [vmem:[#allocation2 + $0x10] sm:$0xff]  ;;  %v427_v47 = vld [vmem:[#allocation2 + $0x8] sm:$0xff]  ;;  %v428_v53 = vld [vmem:[#allocation2 + $0x20] sm:$0xff] }
 0x10b   : > { %v429_v48 = vld [vmem:[#allocation2 + $0x28] sm:$0xff]  ;;  %v430_v54 = vld [vmem:[#allocation2 + $0x38] sm:$0xff] }
 0x10c   : > { %633 = vmatpush1.bf16.msra.mxu0 %v1845_v16  ;;  %676 = vmatpush1.bf16.msra.mxu1 %v1846_v17 }
 0x10d   : > { %634 = vmatprep.subr.bf16.mxu0 %v1847_v18  ;;  %677 = vmatprep.subr.bf16.mxu1 %v1849_v19 }
 0x110   : > { %635 = vmatpush1.bf16.msra.mxu0 %v1851_v20  ;;  %678 = vmatpush1.bf16.msra.mxu1 %v1852_v21 }
 0x111   : > { %636 = vmatprep.subr.bf16.mxu0 %v1853_v22  ;;  %679 = vmatprep.subr.bf16.mxu1 %v1855_v23 }
 0x114   : > { %637 = vmatpush1.bf16.msra.mxu0 %v1857_v24  ;;  %680 = vmatpush1.bf16.msra.mxu1 %v1858_v25 }
 0x115   : > { %638 = vmatprep.subr.bf16.mxu0 %v1859_v26  ;;  %681 = vmatprep.subr.bf16.mxu1 %v1861_v27 }
 0x118   : > { %639 = vmatpush1.bf16.msra.mxu0 %v1863_v28  ;;  %682 = vmatpush1.bf16.msra.mxu1 %v1864_v29 }
 0x119   : > { %640 = vmatprep.subr.bf16.mxu0 %v1865_v30  ;;  %683 = vmatprep.subr.bf16.mxu1 %v1867_v31 }
 0x11c   : > { %641 = vmatpush1.bf16.msra.mxu0 %v1869_v32  ;;  %684 = vmatpush1.bf16.msra.mxu1 %v1870_v33 }
 0x11f   : > { %659 = vmatmul.mubr.bf16.vlgmr.msra.gmra.mxu0 %v433_v36  ;;  %702 = vmatmul.mubr.bf16.vlgmr.msra.gmra.mxu1 %v433_v36 }
 0x1df   : > { %v660_v39 = vpop.f32.mrf.mxu0  ;;  %v703_v40 = vpop.f32.mrf.mxu1 }
 0x1e0   : > { %v712_v43 = vadd.f32 %v660_v39, %v423_v37  ;;  %v714_v44 = vadd.f32 %v703_v40, %v425_v38 }
 0x1e1   : > { %v662_v45 = vpop.f32.mrf.mxu0  ;;  %v705_v46 = vpop.f32.mrf.mxu1 }
 0x1e2   : > { %720 = vst [vmem:[#allocation2 + $0x30] sm:$0xff] %v712_v43  ;;  %722 = vst [vmem:[#allocation2 + $0x18] sm:$0xff] %v714_v44  ;;  %v713_v49 = vadd.f32 %v662_v45, %v424_v41  ;;  %v715_v50 = vadd.f32 %v705_v46, %v426_v42 }
 0x1e3   : > { %v664_v51 = vpop.f32.mrf.mxu0  ;;  %v707_v52 = vpop.f32.mrf.mxu1 }
 0x1e4   : > { %721 = vst [vmem:[#allocation2] sm:$0xff] %v713_v49  ;;  %723 = vst [vmem:[#allocation2 + $0x10] sm:$0xff] %v715_v50  ;;  %v716_v55 = vadd.f32 %v664_v51, %v427_v47  ;;  %v718_v56 = vadd.f32 %v707_v52, %v429_v48  ;;  %731 = sbr.rel (%p1536_p5) target bundleno = 758 (0x2f6), region = 72 }
 0x1e5   : > { %v666_v57 = vpop.f32.mrf.mxu0  ;;  %v709_v58 = vpop.f32.mrf.mxu1 }
 0x1e6   : > { %724 = vst [vmem:[#allocation2 + $0x8] sm:$0xff] %v716_v55  ;;  %726 = vst [vmem:[#allocation2 + $0x28] sm:$0xff] %v718_v56  ;;  %v717_v59 = vadd.f32 %v666_v57, %v428_v53  ;;  %v719_v60 = vadd.f32 %v709_v58, %v430_v54 }
 0x1e8   : > { %725 = vst [vmem:[#allocation2 + $0x20] sm:$0xff] %v717_v59  ;;  %727 = vst [vmem:[#allocation2 + $0x38] sm:$0xff] %v719_v60 }
 0x1e9   : > { %v1871_v61 = vld [vmem:[#allocation13 + $0x74] ss:$8 sps:$4 sm:$0xff]   ;;  %v1875_v63 = vld [vmem:[#allocation13 + $0x70] ss:$8 sps:$4 sm:$0xff]   ;;  %v1877_v1 = vld [vmem:[#allocation13 + $0x64] ss:$8 sps:$4 sm:$0xff]   ;;  %v742_v34 = vlaneseq }
 0x1ea   : > { %v1873_v62 = vld [vmem:[#allocation13 + $0x174] ss:$8 sps:$4 sm:$0xff]   ;;  %1224 = vmatprep.subr.bf16.mxu0 %v1871_v61  ;;  %v1876_v0 = vld [vmem:[#allocation13 + $0x170] ss:$8 sps:$4 sm:$0xff]   ;;  %v1879_v2 = vld [vmem:[#allocation13 + $0x164] ss:$8 sps:$4 sm:$0xff]  }
 0x1eb   : > { %1267 = vmatprep.subr.bf16.mxu1 %v1873_v62  ;;  %1225 = vmatpush1.bf16.msra.mxu0 %v1875_v63  ;;  %v1881_v3 = vld [vmem:[#allocation13 + $0x60] ss:$8 sps:$4 sm:$0xff]   ;;  %v1883_v5 = vld [vmem:[#allocation13 + $0x54] ss:$8 sps:$4 sm:$0xff]   ;;  %v1887_v7 = vld [vmem:[#allocation13 + $0x50] ss:$8 sps:$4 sm:$0xff]  }
 0x1ec   : > { %1268 = vmatpush1.bf16.msra.mxu1 %v1876_v0  ;;  %1226 = vmatprep.subr.bf16.mxu0 %v1877_v1  ;;  %v1882_v4 = vld [vmem:[#allocation13 + $0x160] ss:$8 sps:$4 sm:$0xff]   ;;  %v1885_v6 = vld [vmem:[#allocation13 + $0x154] ss:$8 sps:$4 sm:$0xff]   ;;  %v1888_v8 = vld [vmem:[#allocation13 + $0x150] ss:$8 sps:$4 sm:$0xff]  }
 0x1ed   : > { %1269 = vmatprep.subr.bf16.mxu1 %v1879_v2  ;;  %v1889_v9 = vld [vmem:[#allocation13 + $0x44] ss:$8 sps:$4 sm:$0xff]   ;;  %v1893_v11 = vld [vmem:[#allocation13 + $0x40] ss:$8 sps:$4 sm:$0xff]   ;;  %v1895_v13 = vld [vmem:[#allocation13 + $0x34] ss:$8 sps:$4 sm:$0xff]  }
 0x1ee   : > { %v1891_v10 = vld [vmem:[#allocation13 + $0x144] ss:$8 sps:$4 sm:$0xff]   ;;  %v1894_v12 = vld [vmem:[#allocation13 + $0x140] ss:$8 sps:$4 sm:$0xff]   ;;  %v1897_v14 = vld [vmem:[#allocation13 + $0x134] ss:$8 sps:$4 sm:$0xff]  }
 0x1ef   : > { %1227 = vmatpush1.bf16.msra.mxu0 %v1881_v3  ;;  %v1899_v15 = vld [vmem:[#allocation13 + $0x30] ss:$8 sps:$4 sm:$0xff]   ;;  %v1901_v17 = vld [vmem:[#allocation13 + $0x24] ss:$8 sps:$4 sm:$0xff]   ;;  %v1905_v19 = vld [vmem:[#allocation13 + $0x20] ss:$8 sps:$4 sm:$0xff]  }
 0x1f0   : > { %1270 = vmatpush1.bf16.msra.mxu1 %v1882_v4  ;;  %1228 = vmatprep.subr.bf16.mxu0 %v1883_v5  ;;  %v1900_v16 = vld [vmem:[#allocation13 + $0x130] ss:$8 sps:$4 sm:$0xff]   ;;  %v1903_v18 = vld [vmem:[#allocation13 + $0x124] ss:$8 sps:$4 sm:$0xff]   ;;  %v1906_v20 = vld [vmem:[#allocation13 + $0x120] ss:$8 sps:$4 sm:$0xff]  }
 0x1f1   : > { %1271 = vmatprep.subr.bf16.mxu1 %v1885_v6  ;;  %v1907_v21 = vld [vmem:[#allocation13 + $0x14] ss:$8 sps:$4 sm:$0xff]   ;;  %v1911_v23 = vld [vmem:[#allocation13 + $0x10] ss:$8 sps:$4 sm:$0xff]   ;;  %v1913_v25 = vld [vmem:[#allocation13 + $0x4] ss:$8 sps:$4 sm:$0xff]  }
 0x1f2   : > { %v1909_v22 = vld [vmem:[#allocation13 + $0x114] ss:$8 sps:$4 sm:$0xff]   ;;  %v1912_v24 = vld [vmem:[#allocation13 + $0x110] ss:$8 sps:$4 sm:$0xff]   ;;  %v1915_v26 = vld [vmem:[#allocation13 + $0x104] ss:$8 sps:$4 sm:$0xff]  }
 0x1f3   : > { %1229 = vmatpush1.bf16.msra.mxu0 %v1887_v7  ;;  %v1917_v27 = vld [vmem:[#allocation13] ss:$8 sps:$4 sm:$0xff]   ;;  %v1919_v29 = vld [vmem:[#allocation13 + $0xf4] ss:$8 sps:$4 sm:$0xff]   ;;  %v1923_v31 = vld [vmem:[#allocation13 + $0xf0] ss:$8 sps:$4 sm:$0xff]  }
 0x1f4   : > { %1272 = vmatpush1.bf16.msra.mxu1 %v1888_v8  ;;  %1230 = vmatprep.subr.bf16.mxu0 %v1889_v9  ;;  %v1918_v28 = vld [vmem:[#allocation13 + $0x100] ss:$8 sps:$4 sm:$0xff]   ;;  %v1921_v30 = vld [vmem:[#allocation13 + $0x1f4] ss:$8 sps:$4 sm:$0xff]   ;;  %v1924_v32 = vld [vmem:[#allocation13 + $0x1f0] ss:$8 sps:$4 sm:$0xff]  }
 0x1f5   : > { %1273 = vmatprep.subr.bf16.mxu1 %v1891_v10  ;;  %v1925_v33 = vld [vmem:[#allocation13 + $0xe4] ss:$8 sps:$4 sm:$0xff]   ;;  %v1929_v36 = vld [vmem:[#allocation13 + $0xe0] ss:$8 sps:$4 sm:$0xff]   ;;  %v1931_v38 = vld [vmem:[#allocation13 + $0xd4] ss:$8 sps:$4 sm:$0xff]  }
 0x1f6   : > { %v1927_v35 = vld [vmem:[#allocation13 + $0x1e4] ss:$8 sps:$4 sm:$0xff]   ;;  %v1930_v37 = vld [vmem:[#allocation13 + $0x1e0] ss:$8 sps:$4 sm:$0xff]   ;;  %v743_v39 = vshrl.u32 %v742_v34, 7  ;;  %v733_v50 = vld [vmem:[#allocation2] sm:$0xff] }
 0x1f7   : > { %1231 = vmatpush1.bf16.msra.mxu0 %v1893_v11  ;;  %v1933_v40 = vld [vmem:[#allocation13 + $0x1d4] ss:$8 sps:$4 sm:$0xff]   ;;  %v1935_v41 = vld [vmem:[#allocation13 + $0xd0] ss:$8 sps:$4 sm:$0xff]   ;;  %v1937_v43 = vld [vmem:[#allocation13 + $0xc4] ss:$8 sps:$4 sm:$0xff]  }
 0x1f8   : > { %1274 = vmatpush1.bf16.msra.mxu1 %v1894_v12  ;;  %1232 = vmatprep.subr.bf16.mxu0 %v1895_v13  ;;  %v1936_v42 = vld [vmem:[#allocation13 + $0x1d0] ss:$8 sps:$4 sm:$0xff]   ;;  %v2729_v44 = vsub.s32 1, %v743_v39  ;;  %v756_v45 = vsub.s32 3, %v743_v39  ;;  %v1939_v46 = vld [vmem:[#allocation13 + $0x1c4] ss:$8 sps:$4 sm:$0xff]  }
 0x1f9   : > { %1275 = vmatprep.subr.bf16.mxu1 %v1897_v14  ;;  %v2731_v47 = vsub.s32 0, %v743_v39  ;;  %v1941_v48 = vld [vmem:[#allocation13 + $0xc0] ss:$8 sps:$4 sm:$0xff]   ;;  %v737_v51 = vld [vmem:[#allocation2 + $0x20] sm:$0xff]  ;;  %v752_v54 = vsub.s32 2, %v743_v39  ;;  %v739_v58 = vld [vmem:[#allocation2 + $0x38] sm:$0xff] }
 0x1fa   : > { %v1942_v49 = vld [vmem:[#allocation13 + $0x1c0] ss:$8 sps:$4 sm:$0xff]   ;;  %v740_v52 = vld [vmem:[#allocation10] sm:$0xf]  ;;  %v770_v53 = vld [vmem:[#allocation11] sm:$0xf] }
 0x1fb   : > { %1233 = vmatpush1.bf16.msra.mxu0 %v1899_v15  ;;  %v749_v55 = vrot.slane %v740_v52, %v2729_v44  ;;  %v779_v56 = vrot.slane %v770_v53, %v2729_v44  ;;  %v735_v57 = vld [vmem:[#allocation2 + $0x10] sm:$0xff]  ;;  %v757_v59 = vrot.slane %v740_v52, %v756_v45  ;;  %v1943_v61 = vld [vmem:[#allocation13 + $0xb4] ss:$8 sps:$4 sm:$0xff]   ;;  %v787_v63 = vrot.slane %v770_v53, %v756_v45  ;;  %v736_v0 = vld [vmem:[#allocation2 + $0x8] sm:$0xff] }
 0x1fc   : > { %1276 = vmatpush1.bf16.msra.mxu1 %v1900_v16  ;;  %1234 = vmatprep.subr.bf16.mxu0 %v1901_v17  ;;  %v732_v60 = vld [vmem:[#allocation2 + $0x30] sm:$0xff]  ;;  %v1945_v62 = vld [vmem:[#allocation13 + $0x1b4] ss:$8 sps:$4 sm:$0xff]   ;;  %v745_v1 = vrot.slane %v740_v52, %v2731_v47  ;;  %v775_v2 = vrot.slane %v770_v53, %v2731_v47  ;;  %v753_v9 = vrot.slane %v740_v52, %v752_v54  ;;  %v1947_v10 = vld [vmem:[#allocation13 + $0xb0] ss:$8 sps:$4 sm:$0xff]  }
 0x1fd   : > { %1277 = vmatprep.subr.bf16.mxu1 %v1903_v18  ;;  %v763_v3 = vmul.f32 %v749_v55, %v733_v50  ;;  %v767_v4 = vmul.f32 %v749_v55, %v737_v51  ;;  %v765_v5 = vmul.f32 %v757_v59, %v735_v57  ;;  %v769_v6 = vmul.f32 %v757_v59, %v739_v58  ;;  %v1948_v11 = vld [vmem:[#allocation13 + $0x1b0] ss:$8 sps:$4 sm:$0xff]   ;;  %v1949_v12 = vld [vmem:[#allocation13 + $0xa4] ss:$8 sps:$4 sm:$0xff]   ;;  %v1965_v52 = vld [vmem:[#allocation13 + $0x80] ss:$8 sps:$4 sm:$0xff]  }
 0x1fe   : > { %v762_v7 = vmul.f32 %v745_v1, %v732_v60  ;;  %v766_v8 = vmul.f32 %v745_v1, %v736_v0  ;;  %v1951_v16 = vld [vmem:[#allocation13 + $0x1a4] ss:$8 sps:$4 sm:$0xff]   ;;  %v1959_v39 = vld [vmem:[#allocation13 + $0x90] ss:$8 sps:$4 sm:$0xff]  }
 0x1ff   : > { %1235 = vmatpush1.bf16.msra.mxu0 %v1905_v19  ;;  %v793_v13 = vadd.f32 %v779_v56, %v763_v3  ;;  %v797_v14 = vadd.f32 %v779_v56, %v767_v4  ;;  %v795_v15 = vadd.f32 %v787_v63, %v765_v5  ;;  %v799_v17 = vadd.f32 %v787_v63, %v769_v6  ;;  %v734_v19 = vld [vmem:[#allocation2 + $0x18] sm:$0xff]  ;;  %v892_v59 = vld [vmem:[%s2950_s23] sm:$0x3] }
 0x200   : > { %1278 = vmatpush1.bf16.msra.mxu1 %v1906_v20  ;;  %1236 = vmatprep.subr.bf16.mxu0 %v1907_v21  ;;  %v792_v18 = vadd.f32 %v775_v2, %v762_v7  ;;  %v738_v20 = vld [vmem:[#allocation2 + $0x28] sm:$0xff]  ;;  %v783_v21 = vrot.slane %v770_v53, %v752_v54  ;;  %v897_v60 = vrot.slane %v892_v59, %v2731_v47 }
 0x201   : > { %1279 = vmatprep.subr.bf16.mxu1 %v1909_v22  ;;  %vm801_vm0 = vcmp.gt.f32.partialorder %v793_v13, 0.0  ;;  %vm805_vm1 = vcmp.gt.f32.partialorder %v797_v14, 0.0  ;;  %v809_v22 = vmul.f32 0.2, %v793_v13  ;;  %vm803_vm2 = vcmp.gt.f32.partialorder %v795_v15, 0.0 }
 0x202   : > { %vm807_vm3 = vcmp.gt.f32.partialorder %v799_v17, 0.0  ;;  %vm800_vm4 = vcmp.gt.f32.partialorder %v792_v18, 0.0  ;;  %v1966_v53 = vld [vmem:[#allocation13 + $0x180] ss:$8 sps:$4 sm:$0xff]  }
 0x203   : > { %1237 = vmatpush1.bf16.msra.mxu0 %v1911_v23  ;;  %v813_v23 = vmul.f32 0.2, %v797_v14 }
 0x204   : > { %1280 = vmatpush1.bf16.msra.mxu1 %v1912_v24  ;;  %1238 = vmatprep.subr.bf16.mxu0 %v1913_v25  ;;  %v811_v24 = vmul.f32 0.2, %v795_v15  ;;  %v815_v25 = vmul.f32 0.2, %v799_v17 }
 0x205   : > { %1281 = vmatprep.subr.bf16.mxu1 %v1915_v26  ;;  %v1953_v26 = vld [vmem:[#allocation13 + $0xa0] ss:$8 sps:$4 sm:$0xff]  }
 0x206   : > { %v819_v34 = vsel %vm803_vm2, %v795_v15, %v811_v24 }
 0x207   : > { %1239 = vmatpush1.bf16.msra.mxu0 %v1917_v27  ;;  %v1954_v27 = vld [vmem:[#allocation13 + $0x1a0] ss:$8 sps:$4 sm:$0xff]  }
 0x208   : > { %1282 = vmatpush1.bf16.msra.mxu1 %v1918_v28  ;;  %1240 = vmatprep.subr.bf16.mxu0 %v1919_v29  ;;  %v817_v28 = vsel %vm801_vm0, %v793_v13, %v809_v22  ;;  %v821_v29 = vsel %vm805_vm1, %v797_v14, %v813_v23 }
 0x209   : > { %1283 = vmatprep.subr.bf16.mxu1 %v1921_v30  ;;  %v796_v30 = vadd.f32 %v775_v2, %v766_v8 }
 0x20b   : > { %1241 = vmatpush2.bf16.msra.mxu0 %v1923_v31  ;;  %v1955_v31 = vld [vmem:[#allocation13 + $0x94] ss:$8 sps:$4 sm:$0xff]   ;;  %vm804_vm5 = vcmp.gt.f32.partialorder %v796_v30, 0.0 }
 0x20c   : > { %1284 = vmatpush2.bf16.msra.mxu1 %v1924_v32  ;;  %1242 = vmatprep.subr.bf16.mxu0 %v1925_v33  ;;  %v1957_v32 = vld [vmem:[#allocation13 + $0x194] ss:$8 sps:$4 sm:$0xff]   ;;  %v825_v33 = vpack.c.bf16 %v821_v29, %v817_v28 }
 0x20d   : > { %1285 = vmatprep.subr.bf16.mxu1 %v1927_v35  ;;  %v823_v35 = vsel %vm807_vm3, %v799_v17, %v815_v25 }
 0x20e   : > { %1256 = vmatprep.mubr.bf16.mxu0 %v825_v33 }
 0x20f   : > { %1243 = vmatpush2.bf16.msra.mxu0 %v1929_v36  ;;  %v827_v36 = vpack.c.bf16 %v823_v35, %v819_v34 }
 0x210   : > { %1286 = vmatpush2.bf16.msra.mxu1 %v1930_v37  ;;  %1244 = vmatprep.subr.bf16.mxu0 %v1931_v38  ;;  %v764_v37 = vmul.f32 %v753_v9, %v734_v19  ;;  %v768_v38 = vmul.f32 %v753_v9, %v738_v20 }
 0x211   : > { %1287 = vmatprep.subr.bf16.mxu1 %v1933_v40  ;;  %v808_v40 = vmul.f32 0.2, %v792_v18  ;;  %1299 = vmatprep.mubr.bf16.mxu1 %v827_v36 }
 0x212   : > { %v798_v45 = vadd.f32 %v783_v21, %v768_v38 }
 0x213   : > { %1245 = vmatpush2.bf16.msra.mxu0 %v1935_v41  ;;  %v1960_v41 = vld [vmem:[#allocation13 + $0x190] ss:$8 sps:$4 sm:$0xff]   ;;  %v816_v51 = vsel %vm800_vm4, %v792_v18, %v808_v40 }
 0x214   : > { %1288 = vmatpush2.bf16.msra.mxu1 %v1936_v42  ;;  %1246 = vmatprep.subr.bf16.mxu0 %v1937_v43  ;;  %v812_v42 = vmul.f32 0.2, %v796_v30  ;;  %v794_v43 = vadd.f32 %v783_v21, %v764_v37  ;;  %vm806_vm7 = vcmp.gt.f32.partialorder %v798_v45, 0.0  ;;  %v814_v50 = vmul.f32 0.2, %v798_v45 }
 0x215   : > { %1289 = vmatprep.subr.bf16.mxu1 %v1939_v46  ;;  %v1961_v46 = vld [vmem:[#allocation13 + $0x84] ss:$8 sps:$4 sm:$0xff]  }
 0x216   : > { %vm802_vm6 = vcmp.gt.f32.partialorder %v794_v43, 0.0  ;;  %v820_v54 = vsel %vm804_vm5, %v796_v30, %v812_v42  ;;  %v822_v56 = vsel %vm806_vm7, %v798_v45, %v814_v50 }
 0x217   : > { %1247 = vmatpush2.bf16.msra.mxu0 %v1941_v48  ;;  %v1963_v48 = vld [vmem:[#allocation13 + $0x184] ss:$8 sps:$4 sm:$0xff]   ;;  %v824_v57 = vpack.c.bf16 %v820_v54, %v816_v51 }
 0x218   : > { %1290 = vmatpush2.bf16.msra.mxu1 %v1942_v49  ;;  %1248 = vmatprep.subr.bf16.mxu0 %v1943_v61  ;;  %v810_v49 = vmul.f32 0.2, %v794_v43  ;;  %v901_v61 = vrot.slane %v892_v59, %v2729_v44 }
 0x219   : > { %1291 = vmatprep.subr.bf16.mxu1 %v1945_v62 }
 0x21a   : > { %v818_v55 = vsel %vm802_vm6, %v794_v43, %v810_v49 }
 0x21b   : > { %1249 = vmatpush2.bf16.msra.mxu0 %v1947_v10  ;;  %v826_v58 = vpack.c.bf16 %v822_v56, %v818_v55 }
 0x21c   : > { %1292 = vmatpush2.bf16.msra.mxu1 %v1948_v11  ;;  %1250 = vmatprep.subr.bf16.mxu0 %v1949_v12 }
 0x21d   : > { %1293 = vmatprep.subr.bf16.mxu1 %v1951_v16 }
 0x21f   : > { %1251 = vmatpush2.bf16.msra.mxu0 %v1953_v26 }
 0x220   : > { %1294 = vmatpush2.bf16.msra.mxu1 %v1954_v27  ;;  %1252 = vmatprep.subr.bf16.mxu0 %v1955_v31 }
 0x221   : > { %1295 = vmatprep.subr.bf16.mxu1 %v1957_v32 }
 0x223   : > { %1253 = vmatpush2.bf16.msra.mxu0 %v1959_v39 }
 0x224   : > { %1296 = vmatpush2.bf16.msra.mxu1 %v1960_v41  ;;  %1254 = vmatprep.subr.bf16.mxu0 %v1961_v46 }
 0x225   : > { %1297 = vmatprep.subr.bf16.mxu1 %v1963_v48 }
 0x227   : > { %1255 = vmatpush2.bf16.msra.mxu0 %v1965_v52 }
 0x228   : > { %1298 = vmatpush2.bf16.msra.mxu1 %v1966_v53 }
 0x22a   : > { %1257 = vmatmul.mubr.bf16.vlgmr.msra.gmra.mxu0 %v824_v57 }
 0x22b   : > { %1300 = vmatmul.mubr.bf16.vlgmr.msra.gmra.mxu1 %v826_v58 }
 0x2ea   : > { %v1258_v62 = vpop.f32.mrf.mxu0 }
 0x2eb   : > { %v1301_v63 = vpop.f32.mrf.mxu1  ;;  %v1259_v0 = vadd.f32 %v1258_v62, %v897_v60 }
 0x2ec   : > { %v1260_v1 = vpop.f32.mrf.mxu0 }
 0x2ed   : > { %v1303_v2 = vpop.f32.mrf.mxu1  ;;  %v1302_v3 = vadd.f32 %v1301_v63, %v1259_v0  ;;  %v1261_v4 = vadd.f32 %v1260_v1, %v901_v61 }
 0x2ee   : > { %v1262_v5 = vpop.f32.mrf.mxu0 }
 0x2ef   : > { %v1305_v6 = vpop.f32.mrf.mxu1  ;;  %1310 = vst [vmem:[%s2689_s28] sm:$0xff] %v1302_v3  ;;  %v1304_v7 = vadd.f32 %v1303_v2, %v1261_v4  ;;  %v1263_v8 = vadd.f32 %v1262_v5, %v897_v60 }
 0x2f0   : > { %v1264_v9 = vpop.f32.mrf.mxu0 }
 0x2f1   : > { %1311 = vst [vmem:[%s2689_s28 + $0x8] sm:$0xff] %v1304_v7  ;;  %v1306_v10 = vadd.f32 %v1305_v6, %v1263_v8  ;;  %v1265_v47 = vadd.f32 %v1264_v9, %v901_v61  ;;  %v1307_v11 = vpop.f32.mrf.mxu1 }
 0x2f3   : > { %1312 = vst [vmem:[%s2689_s28 + $0x10] sm:$0xff] %v1306_v10  ;;  %v1308_v44 = vadd.f32 %v1307_v11, %v1265_v47 }
 0x2f5   : > { %1313 = vst [vmem:[%s2689_s28 + $0x18] sm:$0xff] %v1308_v44 }
 0x2f6 PF: > { %s2750_s1 = scalar_lea.sflag [#allocation7], %s393_s12  ;;  %s2952_s29 = sld [smem:[#allocation35_spill]] }
 0x2fc   : > { %p2953_p13 = scmp.ne.s32.totalorder %s2952_s29, 0 }
 0x2fd   : > { %s2954_s24 = sld [smem:[#allocation26_spill]] (%p2953_p13) }
 0x2fe   : > { %1321 = sbr.rel (!%p2953_p13) target bundleno = 803 (0x323), region = 76 }
 0x303   : > { %s1602_s16 = sshll.u32 %s2954_s24, 1 }
 0x304   : > { %s1323_s5 = ssub.s32 5, %s1602_s16 }
 0x305   : > { %p1324_p7 = scmp.lt.s32.totalorder %s1323_s5, 2 }
 0x307   : > { %s2991_s5 = smov (!%p1324_p7, %s1323_s5), 2 }
 0x308   : > { %s2755_s3 = sshll.u32 %s2991_s5, 8 }
 0x309   : > { %s1329_s4 = ssub.s32 512, %s2755_s3 }
 0x30a   : > { %1330 = vsyncadd %s2750_s1, %s1329_s4  ;;  %p1605_p0 = scmp.ne.s32.totalorder %s2755_s3, 0  ;;  %s1619_s6 = sshll.u32 %s2954_s24, 9 }
 0x30b   : > { %s2955_s26 = sld [smem:[#allocation42_spill]]  ;;  %s1336_s12 = sshll.u32 %s2689_s28, 4  ;;  %s2767_s12 = int_to_ptr.vmem [resolvable:$true] %s1336_s12 }
 0x30c   : > { %s2101_s15 = scalar_lea.vmem %s2767_s12, %s2755_s3  ;;  %s2317_s9 = smov [#allocation14]  }
 0x30d   : > { %p2102_p1 = scmp.ne.s32.totalorder %s2767_s12, %s2101_s15  ;;  %s2105_s20 = sshll.u32 %s2317_s9, 4  ;;  %s2106_s20 = int_to_ptr.vmem [resolvable:$false] %s2105_s20 }
 0x30e   : > { %s2107_s27 = scalar_lea.vmem %s2106_s20, 1024  ;;  %p2108_p8 = scmp.lt.s32.totalorder %s2767_s12, %s2106_s20 }
 0x30f   : > { %p2103_p6 = pnand %p2102_p1, %p1605_p0  ;;  %p2109_p11 = scmp.lt.s32.totalorder %s2107_s27, %s2101_s15 }
 0x311   : > { %s2956_s22 = smov %s2955_s26  ;;  %s2764_s21 = scalar_lea.hbm %s2955_s26, %s1619_s6 }
 0x312   : > { %p2104_p3 = pneg %p2103_p6  ;;  %p2110_p12 = por %p2109_p11, %p2108_p8 }
 0x314   : > { %p2111_p4 = pnand %p2110_p12, %p2104_p3 }
 0x316   : > { %2114 = shalt.err (!%p2111_p4)
}
 0x317   : > { %s2115_s28 = scalar_lea.hbm %s2764_s21, %s2755_s3  ;;  %s2119_s30 = scalar_lea.hbm %s2956_s22, 1280 }
 0x318   : > { %p2116_p2 = scmp.ne.s32.totalorder %s2764_s21, %s2115_s28  ;;  %p2120_p5 = scmp.lt.s32.totalorder %s2764_s21, %s2956_s22 }
 0x319   : > { %p2121_p13 = scmp.lt.s32.totalorder %s2119_s30, %s2115_s28 }
 0x31a   : > { %p2117_p9 = pnand %p2116_p2, %p1605_p0 }
 0x31b   : > { %p2122_p7 = por %p2121_p13, %p2120_p5 }
 0x31c   : > { %p2118_p10 = pneg %p2117_p9 }
 0x31e   : > { %p2123_p1 = pnand %p2122_p7, %p2118_p10 }
 0x320   : > { %2126 = shalt.err (!%p2123_p1)
}
 0x321   : > { %s2318_s16 = smov 256   ;;  %s2319_s5 = smov 16  }
 0x322   : > { %1342 = dma.vmem_to_hbm [thread:$0]  (%p1605_p0), %s2767_s12, %s2755_s3, %s2764_s21, %s2750_s1, %s2318_s16, %s2318_s16, %s2319_s5  }
 0x323 PF: > { %s2957_s4 = sld [smem:[#allocation21_spill]]  ;;  %p1648_p6 = scmp.ge.s32.totalorder %s2301_s19, 2 }
 0x324   : > { %s2958_s6 = sld [smem:[#allocation36_spill]] }
 0x329   : > { %s1351_s25 = sand.u32 1, %s2957_s4  }
 0x32a   : > { %p2959_p3 = scmp.ne.s32.totalorder %s2958_s6, 0  ;;  %s1352_s7 = scalar_lea.sflag [#allocation7], %s1351_s25 }
 0x32c   : > { %p1643_p8 = pnand %p1648_p6, %p2959_p3 }
 0x32e   : > { %p1644_p11 = pneg %p1643_p8 }
 0x330   : > { %2228 = dma.done.wait (%p1644_p11), %s1352_s7, 512  }
 0x331   : > { %2230 = vsyncadd (%p1644_p11), %s1352_s7, 4294966784  ;;  %s28_s19 = sadd.s32 1, %s2301_s19   ;;  %s2962_s26 = sld [smem:[#allocation22_spill]] }
 0x332   : > { %p2798_p12 = scmp.ge.s32.totalorder %s28_s19, 8   ;;  %s2963_s27 = sld [smem:[#allocation23_spill]] }
 0x333   : > { %s2964_s28 = sld [smem:[#allocation34_spill]]  ;;  %s2814_s30 = smov 0  }
 0x334   : > { %s2965_s29 = sld [smem:[#allocation24_spill]]  ;;  %s2971_s8 = smov %s2257_s0 }
 0x335   : > { %s2966_s1 = sld [smem:[#allocation30_spill]]  ;;  %s2819_s0 = smov 0  }
 0x336   : > { %s2967_s3 = sld [smem:[#allocation31_spill]]  ;;  %s2972_s9 = smov %s2265_s10 }
 0x337   : > { %s2968_s21 = sld [smem:[#allocation27_spill]]  ;;  %s2973_s10 = smov %s2269_s11 }
 0x338   : > { %s2969_s20 = sld [smem:[#allocation28_spill]]  ;;  %s2975_s12 = smov %s2277_s13 }
 0x339   : > { %s2976_s13 = smov %s2281_s14  ;;  %s2978_s15 = smov %s2293_s17 }
 0x33a   : > { %s2979_s16 = smov %s2297_s18  ;;  %27 = sbr.rel (!%p2798_p12) target bundleno = 23 (0x17), region = 124 }
 0x33b   : > { %s2974_s11 = smov %s2966_s1 }
 0x33c   : > { %s2977_s14 = smov %s2967_s3 }
 0x33d   : > { %s2980_s17 = smov %s2968_s21 }
 0x33e   : > { %s2981_s18 = smov %s2969_s20 }
 0x33f   :  { %1357 = vsyncpa [#allocation6], 1 }
 0x340   :  { %1359 = vsyncpa [#allocation6 + $0x1], 1 }
 0x341   :  { %1360 = vsyncpa [#allocation9], 1 }
 0x342   :  { %1362 = vsyncpa [#allocation9 + $0x1], 1 }
 0x343   :  { %1363 = vsyncpa [#allocation12], 1 }
 0x344   :  { %1364 = vsyncpa [#allocation7], 1 }
 0x345   :  { %1366 = vsyncpa [#allocation7 + $0x1], 1 }

</bundles_post_ra>
